<compile_context>
chip_gen: v5e
topology: v5e:2x2
jax: 0.10.0
libtpu: 0.0.40
codegen_flags: <defaults>
</compile_context>

<pallas_src>
import functools
import math

import jax
import jax.numpy as jnp
from jax.experimental import pallas as pl
from jax.experimental.pallas import tpu as pltpu


# ---------------------------------------------------------------------------
# Kernels
# ---------------------------------------------------------------------------
def _attn_single_kv_kernel(q_ref, k_ref, v_ref, o_ref, *, scale):
    """Fast path: the whole K/V sequence is one kv block (grid = (B, q_tiles))."""
    q = q_ref[...]                                   # (TQ, D)
    if scale is not None:
        q = q * scale                                # fold scale into q (cheaper)
    k = k_ref[...]                                   # (Lk, D)
    v = v_ref[...]                                   # (Lk, Dv)

    # scores (TQ, Lk): plain 2-D matmul on the MXU, f32 accumulation.
    s = jax.lax.dot_general(q, k, (((1,), (1,)), ((), ())),
                            preferred_element_type=jnp.float32)
    # TODO(synk): attn_mask (masked_fill_ with -inf) not wired in; caller passes None.
    s_max = s.max(axis=-1, keepdims=True)
    p = jnp.exp(s - s_max)
    l = p.sum(axis=-1, keepdims=True)
    p = p / l                                        # exact division for f32 parity
    # TODO(synk): training-mode dropout(p=0.5) on the attention weights
    # (pltpu.prng_random_bits); identity here (eval mode).
    out = jax.lax.dot_general(p.astype(v.dtype), v, (((1,), (0,)), ((), ())),
                              preferred_element_type=jnp.float32)
    o_ref[...] = out.astype(o_ref.dtype)


def _attn_flash_kernel(q_ref, k_ref, v_ref, o_ref, m_sc, l_sc, acc_sc, *, scale):
    """Online-softmax path: grid = (B, q_tiles, kv_tiles), kv is the reduction axis."""
    kv = pl.program_id(2)

    @pl.when(kv == 0)
    def _():
        m_sc[...] = jnp.full_like(m_sc, -jnp.inf)
        l_sc[...] = jnp.zeros_like(l_sc)
        acc_sc[...] = jnp.zeros_like(acc_sc)

    q = q_ref[...]                                   # (TQ, D)
    if scale is not None:
        q = q * scale                                # fold scale into q (cheaper)
    k = k_ref[...]                                   # (TK, D)
    v = v_ref[...]                                   # (TK, Dv)

    # scores (TQ, TK): 2-D matmul on the MXU, f32 accumulation.
    s = jax.lax.dot_general(q, k, (((1,), (1,)), ((), ())),
                            preferred_element_type=jnp.float32)
    # TODO(synk): attn_mask (masked_fill_ with -inf) not wired in; caller passes None.

    # Online softmax update (numerically stable, single pass over kv tiles).
    m_prev = m_sc[...]
    m_new = jnp.maximum(m_prev, s.max(axis=-1, keepdims=True))
    alpha = jnp.exp(m_prev - m_new)
    p = jnp.exp(s - m_new)
    l_sc[...] = alpha * l_sc[...] + p.sum(axis=-1, keepdims=True)
    # NOTE: keep MXU operands in the input dtype; pass bf16 q/k/v for full MXU
    # throughput on v6e/v7x (f32 operands are emulated in multiple bf16 passes).
    acc_sc[...] = alpha * acc_sc[...] + jax.lax.dot_general(
        p.astype(v.dtype), v, (((1,), (0,)), ((), ())),
        preferred_element_type=jnp.float32)
    m_sc[...] = m_new

    @pl.when(kv == pl.num_programs(2) - 1)
    def _():
        # TODO(synk): training-mode dropout on attention weights (identity, eval mode).
        o_ref[...] = (acc_sc[...] / l_sc[...]).astype(o_ref.dtype)


# ---------------------------------------------------------------------------
# Wrapper
# ---------------------------------------------------------------------------
def _pad(x, m):
    return ((x + m - 1) // m) * m


def _block_bytes(rows, cols, itemsize):
    # VMEM blocks are (8, 128)-tiled; account for lane/sublane padding.
    return _pad(rows, 8) * _pad(cols, 128) * itemsize


def multimodal_attention(q, k, v, scale=None, attn_mask=None, *,
                         q_tile=256, kv_tile=256,
                         single_kv_max_bytes=8 << 20):
    """q: [B, Lq, D], k: [B, Lk, D], v: [B, Lk, Dv]. Returns [B, Lq, Dv]."""
    assert attn_mask is None, "attn_mask not supported in this kernel"
    B, Lq, D = q.shape
    _, Lk, Dk = k.shape
    assert Dk == D
    Dv = v.shape[-1]
    itemsize = jnp.dtype(q.dtype).itemsize

    TQ = min(q_tile, Lq)
    # Keep the 'parallel' grid extent >= 2 so both v7x TensorCores get work.
    while B * (Lq // TQ) < 2 and TQ > 8 and TQ % 2 == 0 and Lq % (TQ // 2) == 0:
        TQ //= 2
    TK = min(kv_tile, Lk)

    # Fast path: if double-buffered K + V blocks for the whole sequence are
    # only a few MiB, use a single kv step (no online-softmax machinery).
    if single_kv_max_bytes and 2 * (
            _block_bytes(Lk, D, itemsize) + _block_bytes(Lk, Dv, itemsize)
    ) <= single_kv_max_bytes:
        TK = Lk

    assert Lq % TQ == 0 and Lk % TK == 0, "seq lengths must be multiples of tiles"
    n_q, n_kv = Lq // TQ, Lk // TK

    # Accurate scheduler hint: K/V are re-streamed once per q tile.
    cost = pl.CostEstimate(
        flops=2 * B * Lq * Lk * (D + Dv),
        transcendentals=B * Lq * Lk,
        bytes_accessed=(q.size + (k.size + v.size) * n_q + B * Lq * Dv) * itemsize,
    )

    # Explicit VMEM budget: 2x (double-buffered) blocks + f32 scratch, capped
    # at 64 MiB so the same setting is valid on v7x / v6e / v5e.
    blk = (_block_bytes(TQ, D, itemsize) + _block_bytes(TK, D, itemsize)
           + _block_bytes(TK, Dv, itemsize) + _block_bytes(TQ, Dv, itemsize))
    scratch = 2 * _block_bytes(TQ, 1, 4) + _block_bytes(TQ, Dv, 4)
    vmem_limit = int(min(max(2 * (2 * blk + scratch), 32 << 20), 64 << 20))

    if n_kv == 1:
        kernel = functools.partial(_attn_single_kv_kernel, scale=scale)
        grid = (B, n_q)
        dims = ("parallel", "parallel")
        in_specs = [
            pl.BlockSpec((pl.Squeezed(), TQ, D), lambda b, qi: (b, qi, 0)),    # q
            pl.BlockSpec((pl.Squeezed(), Lk, D), lambda b, qi: (b, 0, 0)),     # k
            pl.BlockSpec((pl.Squeezed(), Lk, Dv), lambda b, qi: (b, 0, 0)),    # v
        ]
        out_specs = pl.BlockSpec((pl.Squeezed(), TQ, Dv), lambda b, qi: (b, qi, 0))
        scratch_shapes = []
    else:
        kernel = functools.partial(_attn_flash_kernel, scale=scale)
        grid = (B, n_q, n_kv)
        dims = ("parallel", "parallel", "arbitrary")
        in_specs = [
            pl.BlockSpec((pl.Squeezed(), TQ, D), lambda b, qi, ki: (b, qi, 0)),   # q
            pl.BlockSpec((pl.Squeezed(), TK, D), lambda b, qi, ki: (b, ki, 0)),   # k
            pl.BlockSpec((pl.Squeezed(), TK, Dv), lambda b, qi, ki: (b, ki, 0)),  # v
        ]
        out_specs = pl.BlockSpec((pl.Squeezed(), TQ, Dv), lambda b, qi, ki: (b, qi, 0))
        scratch_shapes = [
            pltpu.VMEM((TQ, 1), jnp.float32),    # running max m
            pltpu.VMEM((TQ, 1), jnp.float32),    # running denom l
            pltpu.VMEM((TQ, Dv), jnp.float32),   # output accumulator
        ]
    # TODO(synk): if Dv < 128 (small heads), fold heads so the output last dim
    # is lane-dense (>=128) and stores are unmasked; not applicable to this
    # generic (B, L, D) module interface.

    return pl.pallas_call(
        kernel,
        out_shape=jax.ShapeDtypeStruct((B, Lq, Dv), q.dtype),
        grid_spec=pltpu.PrefetchScalarGridSpec(
            num_scalar_prefetch=0,
            grid=grid,
            in_specs=in_specs,
            out_specs=out_specs,
            scratch_shapes=scratch_shapes,
        ),
        compiler_params=pltpu.CompilerParams(
            dimension_semantics=dims,
            vmem_limit_bytes=vmem_limit,
        ),
        cost_estimate=cost,
    )(q, k, v)


# ---------------------------------------------------------------------------
# Reference + self-test
# ---------------------------------------------------------------------------
def reference_attention(q, k, v, scale=None):
    qf, kf, vf = (t.astype(jnp.float32) for t in (q, k, v))
    s = jnp.einsum('bqd,bkd->bqk', qf, kf)
    if scale is not None:
        s = s * scale
    p = jax.nn.softmax(s, axis=-1)
    return jnp.einsum('bqk,bkd->bqd', p, vf)


if __name__ == "__main__":
    # Small shapes consistent with the module: 3-D (batch, seq, dim) tensors.
    batch, seq_q, seq_k, d_k, d_v = 2, 32, 32, 32, 32

    key = jax.random.PRNGKey(0)
    kq, kk, kv_ = jax.random.split(key, 3)
    q = jax.random.normal(kq, (batch, seq_q, d_k), dtype=jnp.float32)
    k = jax.random.normal(kk, (batch, seq_k, d_k), dtype=jnp.float32)
    v = jax.random.normal(kv_, (batch, seq_k, d_v), dtype=jnp.float32)

    scale = 1.0 / math.sqrt(d_k)
    ref = reference_attention(q, k, v, scale=scale)

    # 1) Fast path: full K/V resident, single kv step (production defaults).
    out_fast = jax.block_until_ready(multimodal_attention(q, k, v, scale=scale))
    assert out_fast.shape == (batch, seq_q, d_v), (out_fast.shape,)
    err_fast = float(jnp.max(jnp.abs(out_fast - ref)))
    assert jnp.allclose(out_fast, ref, atol=2e-3, rtol=2e-3), err_fast

    # 2) Flash (online-softmax) path: force small tiles so the toy shapes
    #    still exercise the (B, q, kv) = (2, 2, 2) grid.
    out_flash = jax.block_until_ready(
        multimodal_attention(q, k, v, scale=scale,
                             q_tile=16, kv_tile=16, single_kv_max_bytes=0))
    err_flash = float(jnp.max(jnp.abs(out_flash - ref)))
    assert jnp.allclose(out_flash, ref, atol=2e-3, rtol=2e-3), err_flash

    print("KERNEL_OK")
</pallas_src>

<mosaic_0001>
module attributes {stable_mosaic.version = 11 : i64} {
  func.func @_attn_single_kv_kernel(%arg0: i32, %arg1: i32, %arg2: memref<1x32x32xf32, #tpu.memory_space<vmem>>, %arg3: memref<1x32x32xf32, #tpu.memory_space<vmem>>, %arg4: memref<1x32x32xf32, #tpu.memory_space<vmem>>, %arg5: memref<1x32x32xf32, #tpu.memory_space<vmem>>) attributes {dimension_semantics = [#tpu.dimension_semantics<parallel>, #tpu.dimension_semantics<parallel>], iteration_bounds = array<i64: 2, 1>, scalar_prefetch = 0 : i64, scratch_operands = 0 : i64, tpu.core_type = #tpu.core_type<tc>, window_params = [{transform_indices = @transform_0, window_bounds = array<i64: 1, 32, 32>}, {transform_indices = @transform_1, window_bounds = array<i64: 1, 32, 32>}, {transform_indices = @transform_2, window_bounds = array<i64: 1, 32, 32>}, {transform_indices = @transform_3, window_bounds = array<i64: 1, 32, 32>}]} {
    %c0 = arith.constant 0 : index
    %c0_0 = arith.constant 0 : index
    %c0_1 = arith.constant 0 : index
    %0 = vector.load %arg2[%c0, %c0_0, %c0_1] : memref<1x32x32xf32, #tpu.memory_space<vmem>>, vector<1x32x32xf32>
    %1 = vector.shape_cast %0 : vector<1x32x32xf32> to vector<32x32xf32>
    %cst = arith.constant 0.176776692 : f32
    %2 = vector.broadcast %cst : f32 to vector<32x32xf32>
    %3 = arith.mulf %1, %2 : vector<32x32xf32>
    %c0_2 = arith.constant 0 : index
    %c0_3 = arith.constant 0 : index
    %c0_4 = arith.constant 0 : index
    %4 = vector.load %arg3[%c0_2, %c0_3, %c0_4] : memref<1x32x32xf32, #tpu.memory_space<vmem>>, vector<1x32x32xf32>
    %5 = vector.shape_cast %4 : vector<1x32x32xf32> to vector<32x32xf32>
    %c0_5 = arith.constant 0 : index
    %c0_6 = arith.constant 0 : index
    %c0_7 = arith.constant 0 : index
    %6 = vector.load %arg4[%c0_5, %c0_6, %c0_7] : memref<1x32x32xf32, #tpu.memory_space<vmem>>, vector<1x32x32xf32>
    %7 = vector.shape_cast %6 : vector<1x32x32xf32> to vector<32x32xf32>
    %cst_8 = arith.constant dense<0.000000e+00> : vector<32x32xf32>
    %8 = tpu.matmul %3, %5, %cst_8 {dimension_numbers = #tpu.dot_dimension_numbers<[1], [1], [0], [0], [0, 0, 1, 0], [], []>} : vector<32x32xf32>, vector<32x32xf32>, vector<32x32xf32> -> vector<32x32xf32>
    %cst_9 = arith.constant dense<0xFF800000> : vector<32xf32>
    %9 = vector.multi_reduction <maximumf>, %8, %cst_9 [1] : vector<32x32xf32> to vector<32xf32>
    %10 = vector.shape_cast %9 : vector<32xf32> to vector<32x1xf32>
    %11 = vector.broadcast %10 : vector<32x1xf32> to vector<32x32xf32>
    %12 = arith.subf %8, %11 : vector<32x32xf32>
    %13 = math.exp %12 : vector<32x32xf32>
    %cst_10 = arith.constant dense<0.000000e+00> : vector<32xf32>
    %14 = vector.multi_reduction <add>, %13, %cst_10 [1] : vector<32x32xf32> to vector<32xf32>
    %15 = vector.shape_cast %14 : vector<32xf32> to vector<32x1xf32>
    %16 = vector.broadcast %15 : vector<32x1xf32> to vector<32x32xf32>
    %17 = arith.divf %13, %16 : vector<32x32xf32>
    %cst_11 = arith.constant dense<0.000000e+00> : vector<32x32xf32>
    %18 = tpu.matmul %17, %7, %cst_11 {dimension_numbers = #tpu.dot_dimension_numbers<[1], [0], [0], [1], [0, 0, 1, 1], [], []>} : vector<32x32xf32>, vector<32x32xf32>, vector<32x32xf32> -> vector<32x32xf32>
    %c0_12 = arith.constant 0 : index
    %c0_13 = arith.constant 0 : index
    %c0_14 = arith.constant 0 : index
    %19 = vector.load %arg5[%c0_12, %c0_13, %c0_14] : memref<1x32x32xf32, #tpu.memory_space<vmem>>, vector<1x32x32xf32>
    %20 = vector.shape_cast %19 : vector<1x32x32xf32> to vector<32x32xf32>
    %21 = vector.shape_cast %18 : vector<32x32xf32> to vector<1x32x32xf32>
    tpu.vector_store %arg5[%c0_12, %c0_13, %c0_14], %21 {strides = array<i32>} : memref<1x32x32xf32, #tpu.memory_space<vmem>>, vector<1x32x32xf32>,
    return
  }
  func.func @transform_0(%arg0: i32, %arg1: i32) -> (i32, i32, i32) {
    %c0_i32 = arith.constant 0 : i32
    %c0_i32_0 = arith.constant 0 : i32
    return %arg0, %arg1, %c0_i32 : i32, i32, i32
  }
  func.func @transform_1(%arg0: i32, %arg1: i32) -> (i32, i32, i32) {
    %c0_i32 = arith.constant 0 : i32
    %c0_i32_0 = arith.constant 0 : i32
    %c0_i32_1 = arith.constant 0 : i32
    return %arg0, %c0_i32, %c0_i32_0 : i32, i32, i32
  }
  func.func @transform_2(%arg0: i32, %arg1: i32) -> (i32, i32, i32) {
    %c0_i32 = arith.constant 0 : i32
    %c0_i32_0 = arith.constant 0 : i32
    %c0_i32_1 = arith.constant 0 : i32
    return %arg0, %c0_i32, %c0_i32_0 : i32, i32, i32
  }
  func.func @transform_3(%arg0: i32, %arg1: i32) -> (i32, i32, i32) {
    %c0_i32 = arith.constant 0 : i32
    %c0_i32_0 = arith.constant 0 : i32
    return %arg0, %arg1, %c0_i32 : i32, i32, i32
  }
}

</mosaic_0001>

<bundles_post_ra>
// kernel: tpu_custom_call.1
= control target key start
LH: loop header
LB: loop body
LE: loop exit
PB: predicated region body
PF: predicated region fallthrough
CT: control target
= control target key end

     0   :  { %s1196_s0 = inlined_call_operand.hbm [shape: f32[2,32,32], index: 0, kind: input, shape index: {}]   ;;  %s1197_s1 = inlined_call_operand.hbm [shape: f32[2,32,32], index: 1, kind: input, shape index: {}]   ;;  %s1198_s2 = inlined_call_operand.hbm [shape: f32[2,32,32], index: 2, kind: input, shape index: {}]   ;;  %s1199_s3 = inlined_call_operand.hbm [shape: f32[2,32,32], index: 3, kind: output, shape index: {}]  }
   0x1   :  { %1205 = sst [smem:[#allocation17_spill]] %s1197_s1 }
   0x2   :  { %8 = vsyncpa [#allocation3], 0 }
   0x3   :  { %10 = vsyncpa [#allocation3 + $0x1], 0 }
   0x4   :  { %11 = vsyncpa [#allocation6], 0 }
   0x5   :  { %13 = vsyncpa [#allocation6 + $0x1], 0 }
   0x6   :  { %14 = vsyncpa [#allocation4], 0 }
   0x7   :  { %16 = vsyncpa [#allocation4 + $0x1], 0  ;;  %s992_s12 = smov 0   ;;  %s994_s13 = smov 0  }
   0x8   :  { %s996_s14 = smov 0   ;;  %s998_s15 = smov 0  }
   0x9   :  { %s1000_s16 = smov 0   ;;  %s1002_s17 = smov 0  }
   0xa LB: > { %1206 = sst [smem:[#allocation12_spill]] %s954_s14  ;;  %s1023_s18 = sadd.s32 4294967295, %s966_s17   ;;  %s966_s17 = sphi %s1002_s17, %s22_s17   ;;  %s962_s16 = sphi %s1000_s16, %s1222_s16   ;;  %s958_s15 = sphi %s998_s15, %s1221_s15   ;;  %s954_s14 = sphi %s996_s14, %s1225_s14   ;;  %s950_s13 = sphi %s994_s13, %s1224_s13   ;;  %s946_s12 = sphi %s992_s12, %s1223_s12  }
   0xb   : > { %1207 = sst [smem:[#allocation13_spill]] %s962_s16  ;;  %s652_s19 = sadd.s32 4294967294, %s966_s17  }
   0xc   : > { %1208 = sst [smem:[#allocation14_spill]] %s966_s17  ;;  %s34_s20 = sadd.s32 1, %s962_s16 }
   0xd   : > { %s43_s21 = sadd.s32 1, %s954_s14  ;;  %p36_p0 = scmp.ge.s32.totalorder %s34_s20, 2 }
   0xe   : > { %p50_p1 = scmp.ne.s32.totalorder %s954_s14, %s950_s13  ;;  %p51_p2 = scmp.eq.s32.totalorder %s966_s17, 0 }
   0xf   : > { %p56_p3 = scmp.ne.s32.totalorder %s950_s13, %s946_s12  ;;  %s1227_s20 = smov (%p36_p0, %s34_s20), 0 }
  0x10   : > { %1209 = sst [smem:[#allocation15_spill]] %s1227_s20  ;;  %p1035_p4 = por %p51_p2, %p50_p1 }
  0x11   : > { %p57_p5 = scmp.eq.s32.totalorder %s1023_s18, 0  ;;  %s38_s23 = ssub.s32 %s962_s16, %s1227_s20 }
  0x12   : > { %p134_p6 = scmp.eq.s32.totalorder %s1023_s18, 1  ;;  %p41_p7 = scmp.eq.s32.totalorder %s38_s23, 0 }
  0x13   : > { %p1043_p8 = por %p57_p5, %p56_p3  ;;  %p140_p10 = scmp.eq.s32.totalorder %s652_s19, 1 }
  0x14   : > { %p1047_p9 = por %p134_p6, %p50_p1  ;;  %p654_p12 = scmp.ge.s32.totalorder %s966_s17, 2 }
  0x15   : > { %s1052_s26 = scalar_select %p41_p7, %s954_s14, %s43_s21  }
  0x16   : > { %p1054_p11 = por %p140_p10, %p56_p3  ;;  %p720_p13 = scmp.lt.s32.totalorder %s966_s17, 2 }
  0x17   : > { %1213 = sst [smem:[#allocation16_spill]] %s1052_s26  ;;  %s160_s28 = sand.u32 1, %s954_s14  }
  0x18   : > { %s1061_s29 = sshll.u32 %s160_s28, 5  ;;  %s686_s30 = sshll.u32 %s962_s16, 5 }
  0x19   : > { %p1066_p0 = pnand %p720_p13, %p1035_p4  ;;  %s184_s5 = sand.u32 1, %s966_s17  }
  0x1a   : > { %s1216_s1 = sld [smem:[#allocation17_spill]]  ;;  %s188_s10 = scalar_lea.vmem [#allocation5], %s1061_s29 }
  0x1b   : > { %s196_s11 = sshll.u32 %s188_s10, 4  ;;  %s185_s19 = scalar_lea.sflag [#allocation6], %s184_s5  ;;  %s197_s11 = int_to_ptr.vmem [resolvable:$true] %s196_s11 }
  0x1c   : > { %s968_s21 = smov 128   ;;  %s969_s22 = smov 8  }
  0x1d   : > { %p664_p1 = scmp.ge.s32.totalorder %s966_s17, 1  ;;  %p226_p2 = scmp.lt.s32.totalorder %s966_s17, 3 }
  0x1e   : > { %s161_s5 = scalar_lea.sflag [#allocation3], %s160_s28  ;;  %s215_s16 = scalar_lea.hbm %s1198_s2, %s686_s30 }
  0x1f   : > { %p1079_p3 = pnand %p664_p1, %p226_p2  ;;  %s216_s26 = sshll.u32 %s215_s16, 4  ;;  %s217_s26 = int_to_ptr.hbm [resolvable:$true] %s216_s26 }
  0x20   : > { %s193_s8 = scalar_lea.hbm %s1216_s1, %s686_s30  ;;  %s164_s1 = scalar_lea.vmem [#allocation2], %s1061_s29 }
  0x21   : > { %s194_s9 = sshll.u32 %s193_s8, 4  ;;  %s171_s8 = scalar_lea.hbm %s1196_s0, %s686_s30  ;;  %s195_s9 = int_to_ptr.hbm [resolvable:$true] %s194_s9 }
  0x22   : > { %712 = dma.hbm_to_vmem [thread:$0]  (!%p1066_p0), %s195_s9, 512, %s197_s11, %s185_s19, %s968_s21, %s968_s21, %s969_s22  }
  0x23   : > { %s172_s10 = sshll.u32 %s171_s8, 4  ;;  %s174_s20 = sshll.u32 %s164_s1, 4  ;;  %s173_s10 = int_to_ptr.hbm [resolvable:$true] %s172_s10  ;;  %s175_s20 = int_to_ptr.vmem [resolvable:$true] %s174_s20 }
  0x24   : > { %709 = dma.hbm_to_vmem [thread:$0]  (!%p1066_p0), %s173_s10, 512, %s175_s20, %s161_s5, %s968_s21, %s968_s21, %s969_s22  }
  0x25   : > { %s210_s14 = scalar_lea.vmem [#allocation7], %s1061_s29  ;;  %230 = sbr.rel (%p1079_p3) target bundleno = 612 (0x264), region = 32 }
  0x26   : > { %s218_s17 = sshll.u32 %s210_s14, 4  ;;  %s1098_s1 = sand.u32 (!%p1079_p3), 1, %s950_s13   ;;  %s219_s17 = int_to_ptr.vmem [resolvable:$true] %s218_s17 }
  0x27   : > { %715 = dma.hbm_to_vmem [thread:$0]  (!%p1066_p0), %s217_s26, 512, %s219_s17, %s185_s19, %s968_s21, %s968_s21, %s969_s22  }
  0x28   : > { %s1101_s20 = sshll.u32 (!%p1079_p3), %s1098_s1, 5  ;;  %s233_s28 = scalar_lea.sflag (!%p1079_p3), [#allocation3], %s1098_s1 }
  0x29   : > { %s236_s16 = scalar_lea.vmem (!%p1079_p3), [#allocation2], %s1101_s20 }
  0x2a   : > { %933 = dma.done.wait (%p1043_p8), %s233_s28, 512  }
  0x2b   : > { %935 = vsyncadd (%p1043_p8), %s233_s28, 4294966784  ;;  %s242_s14 = sand.u32 1, %s1023_s18   ;;  %s246_s26 = scalar_lea.vmem [#allocation5], %s1101_s20 }
  0x2c   : > { %s243_s17 = scalar_lea.sflag [#allocation6], %s242_s14 }
  0x2d   : > { %937 = dma.done.wait (%p1043_p8), %s243_s17, 1024  }
  0x2e   : > { %939 = vsyncadd (%p1043_p8), %s243_s17, 4294966272  ;;  %vm308_vm0 = vcmask 261120   ;;  %v303_v0 = vld [vmem:[%s246_s26 + $0x18] sm:$0xff]  ;;  %v302_v1 = vld [vmem:[%s246_s26 + $0x10] sm:$0xff]  ;;  %s256_s18 = scalar_lea.vmem [#allocation7], %s1101_s20  ;;  %s289_s24 = scalar_lea.vmem [#allocation8], %s1101_s20 }
  0x2f   : > { %669 = vmatpush.xpose.msk.msra.mxu0 %vm308_vm0, %v303_v0  ;;  %690 = vmatpush.xpose.msk.msra.mxu2 %vm308_vm0, %v303_v0  ;;  %v301_v2 = vld [vmem:[%s246_s26 + $0x8] sm:$0xff]  ;;  %v292_v3 = vld [vmem:[%s236_s16] sm:$0xff]  ;;  %v294_v4 = vld [vmem:[%s236_s16 + $0x10] sm:$0xff]  ;;  %s689_s29 = sshll.u32 %s958_s15, 5  ;;  %s518_s21 = sshll.u32 %s289_s24, 4  ;;  %s519_s21 = int_to_ptr.vmem [resolvable:$true] %s518_s21 }
  0x30   : > { %v300_v5 = vld [vmem:[%s246_s26] sm:$0xff]  ;;  %v296_v6 = vmul.f32 0.17677669, %v292_v3  ;;  %v298_v7 = vmul.f32 0.17677669, %v294_v4  ;;  %v293_v8 = vld [vmem:[%s236_s16 + $0x8] sm:$0xff]  ;;  %s517_s19 = scalar_lea.hbm %s1199_s3, %s689_s29 }
  0x31   : > { %v295_v9 = vld [vmem:[%s236_s16 + $0x18] sm:$0xff]  ;;  %v297_v10 = vmul.f32 0.17677669, %v293_v8  ;;  %v306_v41 = vld [vmem:[%s256_s18 + $0x10] sm:$0xff]  ;;  %v305_v42 = vld [vmem:[%s256_s18 + $0x8] sm:$0xff]  ;;  %s520_s22 = sshll.u32 %s517_s19, 4  ;;  %s521_s22 = int_to_ptr.hbm [resolvable:$true] %s520_s22 }
  0x32   : > { %v299_v11 = vmul.f32 0.17677669, %v295_v9  ;;  %v307_v40 = vld [vmem:[%s256_s18 + $0x18] sm:$0xff]  ;;  %v304_v43 = vld [vmem:[%s256_s18] sm:$0xff]  ;;  %s504_s23 = scalar_lea.sflag [#allocation4], %s1098_s1  ;;  %s894_s15 = sshra.s32 %s521_s22, 4  ;;  %s895_s15 = int_to_ptr.hbm [resolvable:$true] %s894_s15 }
  0x33   : > { %670 = vmatpush.xpose.msk.msra.mxu0 %vm308_vm0, %v302_v1  ;;  %691 = vmatpush.xpose.msk.msra.mxu2 %vm308_vm0, %v302_v1  ;;  %s896_s6 = scalar_lea.hbm %s895_s15, 32  ;;  %s900_s10 = scalar_lea.hbm %s1199_s3, 64 }
  0x34   : > { %694 = vmatpush.msra.mxu3 %v307_v40  ;;  %482 = vmatpush.msra.mxu1 %v307_v40  ;;  %p897_p4 = scmp.ne.s32.totalorder %s895_s15, %s896_s6  ;;  %p901_p7 = scmp.lt.s32.totalorder %s895_s15, %s1199_s3 }
  0x35   : > { %p902_p8 = scmp.lt.s32.totalorder %s900_s10, %s896_s6 }
  0x36   : > { %695 = vmatpush.msra.mxu3 %v306_v41  ;;  %483 = vmatpush.msra.mxu1 %v306_v41  ;;  %p898_p5 = pnand %p897_p4, %p1047_p9 }
  0x37   : > { %671 = vmatpush.xpose.msk.msra.mxu0 %vm308_vm0, %v301_v2  ;;  %692 = vmatpush.xpose.msk.msra.mxu2 %vm308_vm0, %v301_v2  ;;  %p903_p10 = por %p902_p8, %p901_p7 }
  0x38   : > { %696 = vmatpush.msra.mxu3 %v305_v42  ;;  %484 = vmatpush.msra.mxu1 %v305_v42  ;;  %p899_p6 = pneg %p898_p5 }
  0x3a   : > { %697 = vmatpush.msra.mxu3 %v304_v43  ;;  %485 = vmatpush.msra.mxu1 %v304_v43  ;;  %p904_p13 = pnand %p903_p10, %p899_p6 }
  0x3b   : > { %672 = vmatpush.xpose.msk.msra.mxu0 %vm308_vm0, %v300_v5  ;;  %693 = vmatpush.xpose.msk.msra.mxu2 %vm308_vm0, %v300_v5 }
  0x3e   : > { %673 = vmatmul.msk.f32.vlgmr.msra.gmra.mxu0 %vm308_vm0, %v296_v6  ;;  %675 = vmatmul.msk.f32.vlgmr.msra.gmra.mxu2 %vm308_vm0, %v298_v7 }
  0x46   : > { %674 = vmatmul.msk.f32.gmra.mxu0 %vm308_vm0, %v297_v10  ;;  %676 = vmatmul.msk.f32.gmra.mxu2 %vm308_vm0, %v299_v11 }
  0xbb   : > { %v350_v12 = vpop.f32.mrf.mxu0 }
  0xbc   : > { %v362_v19 = vsel %vm308_vm0, %v350_v12, -inf }
  0xc1   : > { %v356_v13 = vpop.f32.mrf.mxu2 }
  0xc2   : > { %v368_v18 = vsel %vm308_vm0, %v356_v13, -inf }
  0xc3   : > { %v353_v14 = vpop.f32.mrf.mxu0 }
  0xc4   : > { %v365_v15 = vsel %vm308_vm0, %v353_v14, -inf }
  0xc5   : > { %366 = vmax.xlane.f32.xlu0 %v365_v15 }
  0xc9   : > { %v359_v16 = vpop.f32.mrf.mxu2 }
  0xca   : > { %v371_v17 = vsel %vm308_vm0, %v359_v16, -inf }
  0xcb   : > { %372 = vmax.xlane.f32.xlu1 %v371_v17 }
  0xcd   : > { %369 = vmax.xlane.f32.xlu0 %v368_v18 }
  0xd3   : > { %363 = vmax.xlane.f32.xlu1 %v362_v19 }
 0x138   : > { %v367_v20 = vpop.xlane.xlu0 %366 }
 0x139   : > { %v375_v21 = vsub.f32 %v353_v14, %v367_v20 }
 0x13b   : > { %v380_v22 = vmul.f32 1.442695, %v375_v21 }
 0x13d   : > { %774 = vpow2.f32 %v380_v22 }
 0x13e   : > { %v373_v23 = vpop.xlane.xlu1 %372 }
 0x13f   : > { %v377_v24 = vsub.f32 %v359_v16, %v373_v23 }
 0x140   : > { %v370_v25 = vpop.xlane.xlu0 %369 }
 0x141   : > { %v384_v26 = vmul.f32 1.442695, %v377_v24  ;;  %v376_v27 = vsub.f32 %v356_v13, %v370_v25 }
 0x143   : > { %v775_v28 = vpop.eup %774  ;;  %776 = vpow2.f32 %v384_v26  ;;  %v382_v29 = vmul.f32 1.442695, %v376_v27 }
 0x144   : > { %v389_v30 = vsel %vm308_vm0, %v775_v28, 0.0 }
 0x145   : > { %778 = vpow2.f32 %v382_v29  ;;  %390 = vadd.xlane.f32.xlu2 %v389_v30 }
 0x146   : > { %v364_v31 = vpop.xlane.xlu1 %363 }
 0x147   : > { %v374_v32 = vsub.f32 %v350_v12, %v364_v31 }
 0x149   : > { %v1132_v33 = vpop.eup %776  ;;  %v378_v34 = vmul.f32 1.442695, %v374_v32 }
 0x14a   : > { %v395_v35 = vsel %vm308_vm0, %v1132_v33, 0.0 }
 0x14b   : > { %v1136_v36 = vpop.eup %778  ;;  %780 = vpow2.f32 %v378_v34  ;;  %396 = vadd.xlane.f32.xlu0 %v395_v35 }
 0x14c   : > { %v392_v37 = vsel %vm308_vm0, %v1136_v36, 0.0 }
 0x14d   : > { %393 = vadd.xlane.f32.xlu2 %v392_v37 }
 0x151   : > { %v1140_v38 = vpop.eup %780 }
 0x152   : > { %v386_v39 = vsel %vm308_vm0, %v1140_v38, 0.0 }
 0x153   : > { %387 = vadd.xlane.f32.xlu1 %v386_v39 }
 0x1b8   : > { %v391_v44 = vpop.xlane.xlu2 %390 }
 0x1b9   : > { %782 = vrcp.f32 %v391_v44  ;;  %v424_v50 = vand.u32 2147483648, %v391_v44  ;;  %v422_v52 = vand.u32 2147483647, %v391_v44  ;;  %vm418_vm2 = vweird.f32 %v391_v44 }
 0x1bb   : > { %v425_v58 = vor.u32 1.1754944e-38, %v424_v50  ;;  %vm423_vm4 = vcmp.eq.f32.partialorder %v422_v52, 8.507059e+37 }
 0x1be   : > { %v397_v45 = vpop.xlane.xlu0 %396 }
 0x1bf   : > { %v783_v46 = vpop.eup %782  ;;  %784 = vrcp.f32 %v397_v45  ;;  %vm448_vm7 = vweird.f32 %v397_v45  ;;  %v452_v12 = vand.u32 2147483647, %v397_v45  ;;  %v454_v13 = vand.u32 2147483648, %v397_v45 }
 0x1c0   : > { %v414_v47 = vmul.f32 %v783_v46, %v391_v44  ;;  %v394_v48 = vpop.xlane.xlu2 %393  ;;  %vm419_vm1 = vweird.f32 %v783_v46 }
 0x1c1   : > { %786 = vrcp.f32 %v394_v48  ;;  %vm420_vm3 = vmor %vm418_vm2, %vm419_vm1  ;;  %v437_v1 = vand.u32 2147483647, %v394_v48  ;;  %v439_v2 = vand.u32 2147483648, %v394_v48  ;;  %vm433_vm6 = vweird.f32 %v394_v48 }
 0x1c2   : > { %v415_v49 = vsub.f32 1.0, %v414_v47  ;;  %v455_v21 = vor.u32 1.1754944e-38, %v454_v13  ;;  %vm453_vm15 = vcmp.eq.f32.partialorder %v452_v12, 8.507059e+37 }
 0x1c3   : > { %vm438_vm9 = vcmp.eq.f32.partialorder %v437_v1, 8.507059e+37  ;;  %v440_v8 = vor.u32 1.1754944e-38, %v439_v2 }
 0x1c4   : > { %v416_v51 = vmul.f32 %v783_v46, %v415_v49 }
 0x1c5   : > { %v785_v53 = vpop.eup %784 }
 0x1c6   : > { %v444_v54 = vmul.f32 %v785_v53, %v397_v45  ;;  %v388_v55 = vpop.xlane.xlu1 %387  ;;  %v417_v56 = vadd.f32 %v783_v46, %v416_v51  ;;  %vm449_vm10 = vweird.f32 %v785_v53 }
 0x1c7   : > { %v787_v57 = vpop.eup %786  ;;  %788 = vrcp.f32 %v388_v55  ;;  %v409_v14 = vand.u32 2147483648, %v388_v55  ;;  %v407_v17 = vand.u32 2147483647, %v388_v55  ;;  %vm450_vm12 = vmor %vm448_vm7, %vm449_vm10  ;;  %vm403_vm13 = vweird.f32 %v388_v55 }
 0x1c8   : > { %v445_v59 = vsub.f32 1.0, %v444_v54  ;;  %v429_v60 = vmul.f32 %v787_v57, %v394_v48  ;;  %v421_v61 = vsel %vm420_vm3, %v783_v46, %v417_v56  ;;  %vm434_vm5 = vweird.f32 %v787_v57 }
 0x1c9   : > { %v426_v62 = vsel %vm423_vm4, %v425_v58, %v421_v61  ;;  %vm435_vm8 = vmor %vm433_vm6, %vm434_vm5  ;;  %v410_v22 = vor.u32 1.1754944e-38, %v409_v14  ;;  %vm408_vm1 = vcmp.eq.f32.partialorder %v407_v17, 8.507059e+37 }
 0x1ca   : > { %v430_v63 = vsub.f32 1.0, %v429_v60  ;;  %v427_v0 = vmul.f32 %v775_v28, %v426_v62  ;;  %v446_v3 = vmul.f32 %v785_v53, %v445_v59 }
 0x1cc   : > { %v431_v4 = vmul.f32 %v787_v57, %v430_v63  ;;  %678 = vmatmul.msk.f32.vlgmr.msra.gmra.mxu3 %vm308_vm0, %v427_v0  ;;  %v447_v9 = vadd.f32 %v785_v53, %v446_v3 }
 0x1cd   : > { %v789_v5 = vpop.eup %788 }
 0x1ce   : > { %v432_v6 = vadd.f32 %v787_v57, %v431_v4  ;;  %v399_v7 = vmul.f32 %v789_v5, %v388_v55  ;;  %vm404_vm11 = vweird.f32 %v789_v5  ;;  %v451_v20 = vsel %vm450_vm12, %v785_v53, %v447_v9 }
 0x1cf   : > { %vm405_vm14 = vmor %vm403_vm13, %vm404_vm11  ;;  %v456_v25 = vsel %vm453_vm15, %v455_v21, %v451_v20 }
 0x1d0   : > { %v400_v10 = vsub.f32 1.0, %v399_v7  ;;  %v436_v11 = vsel %vm435_vm8, %v787_v57, %v432_v6  ;;  %v457_v27 = vmul.f32 %v1132_v33, %v456_v25 }
 0x1d1   : > { %v441_v15 = vsel %vm438_vm9, %v440_v8, %v436_v11 }
 0x1d2   : > { %v401_v16 = vmul.f32 %v789_v5, %v400_v10  ;;  %v442_v18 = vmul.f32 %v1136_v36, %v441_v15 }
 0x1d4   : > { %v402_v19 = vadd.f32 %v789_v5, %v401_v16  ;;  %679 = vmatmul.msk.f32.gmra.mxu3 %vm308_vm0, %v442_v18 }
 0x1d6   : > { %v406_v23 = vsel %vm405_vm14, %v789_v5, %v402_v19 }
 0x1d7   : > { %v411_v24 = vsel %vm408_vm1, %v410_v22, %v406_v23 }
 0x1d8   : > { %v412_v26 = vmul.f32 %v1140_v38, %v411_v24 }
 0x1da   : > { %677 = vmatmul.msk.f32.vlgmr.msra.gmra.mxu1 %vm308_vm0, %v412_v26 }
 0x1dc   : > { %680 = vmatmul.msk.f32.gmra.mxu3 %vm308_vm0, %v457_v27 }
 0x24f   : > { %v490_v28 = vpop.f32.mrf.mxu3 }
 0x250   : > { %500 = vst.msk [vmem:[%s289_s24 + $0x8] sm:$0xff] %vm308_vm0, %v490_v28 }
 0x257   : > { %v487_v29 = vpop.f32.mrf.mxu1  ;;  %v493_v30 = vpop.f32.mrf.mxu3 }
 0x258   : > { %499 = vst.msk [vmem:[%s289_s24] sm:$0xff] %vm308_vm0, %v487_v29 }
 0x259   : > { %501 = vst.msk [vmem:[%s289_s24 + $0x10] sm:$0xff] %vm308_vm0, %v493_v30 }
 0x25f   : > { %v496_v31 = vpop.f32.mrf.mxu3 }
 0x260   : > { %502 = vst.msk [vmem:[%s289_s24 + $0x18] sm:$0xff] %vm308_vm0, %v496_v31 }
 0x261   : > { %907 = shalt.err (!%p904_p13)
}
 0x262   : > { %s970_s11 = smov 128   ;;  %s971_s1 = smov 8  }
 0x263   : > { %704 = dma.vmem_to_hbm [thread:$0]  (%p1047_p9), %s519_s21, 512, %s521_s22, %s504_s23, %s970_s11, %s970_s11, %s971_s1  }
 0x264 PF: > { %s1218_s20 = sld [smem:[#allocation14_spill]]  ;;  %s535_s28 = sand.u32 1, %s946_s12  }
 0x265   : > { %p717_p0 = pnand %p654_p12, %p1054_p11  ;;  %s536_s16 = scalar_lea.sflag [#allocation4], %s535_s28 }
 0x267   : > { %p718_p1 = pneg %p717_p0 }
 0x269   : > { %941 = dma.done.wait (%p718_p1), %s536_s16, 512  }
 0x26a   : > { %943 = vsyncadd (%p718_p1), %s536_s16, 4294966784  ;;  %s22_s17 = sadd.s32 1, %s1218_s20   ;;  %s1219_s14 = sld [smem:[#allocation12_spill]] }
 0x26b   : > { %p19_p2 = scmp.ge.s32.totalorder %s22_s17, 4   ;;  %s1220_s26 = sld [smem:[#allocation16_spill]] }
 0x26c   : > { %s1221_s15 = sld [smem:[#allocation13_spill]]  ;;  %s1223_s12 = smov %s950_s13 }
 0x26d   : > { %s1222_s16 = sld [smem:[#allocation15_spill]]  ;;  %21 = sbr.rel (!%p19_p2) target bundleno = 10 (0xa), region = 101 }
 0x270   : > { %s1224_s13 = smov %s1219_s14 }
 0x271   : > { %s1225_s14 = smov %s1220_s26 }
 0x272   :  { %542 = vsyncpa [#allocation3], 1 }
 0x273   :  { %544 = vsyncpa [#allocation3 + $0x1], 1 }
 0x274   :  { %545 = vsyncpa [#allocation6], 1 }
 0x275   :  { %547 = vsyncpa [#allocation6 + $0x1], 1 }
 0x276   :  { %548 = vsyncpa [#allocation4], 1 }
 0x277   :  { %550 = vsyncpa [#allocation4 + $0x1], 1 }

</bundles_post_ra>
